<compile_context>
chip_gen: v6e
topology: v6e:2x2x1
jax: 0.10.0
libtpu: 0.0.40
codegen_flags: <defaults>
</compile_context>

<pallas_src>
import functools

import jax
import jax.numpy as jnp
import numpy as np
from jax import lax
from jax.experimental import pallas as pl
from jax.experimental.pallas import tpu as pltpu


# --------------------------------------------------------------------------- #
# Pass 1: fused K/V projection + online key-softmax -> per-head contexts
# --------------------------------------------------------------------------- #
def _context_kernel(x_ref, wkv_ref, bkv_ref, ctx_ref, m_sc, l_sc, acc_sc, *,
                    dim, head_count):
    """x_ref: (1,C,Lt) bf16; wkv_ref: (2*dim,C) bf16; bkv_ref: (2*dim,1) f32.
    ctx_ref: (1,dim,hc) f32 where ctx[h*hc+u, v] = sum_l softmaxK_h[u,l] * V_h[v,l].
    Scratch: m_sc/l_sc (dim,1) running max / exp-sum, acc_sc (dim,hc) context acc."""
    hc = dim // head_count
    t = pl.program_id(1)

    @pl.when(t == 0)
    def _init():
        m_sc[...] = jnp.full(m_sc.shape, -jnp.inf, m_sc.dtype)
        l_sc[...] = jnp.zeros(l_sc.shape, l_sc.dtype)
        acc_sc[...] = jnp.zeros(acc_sc.shape, acc_sc.dtype)

    x = x_ref[0]                                                  # (C, Lt) bf16
    # Fused K/V 1x1 conv: one MXU matmul with M = 2*dim (better MXU fill than
    # two separate dim-row matmuls), bf16 operands, f32 accumulation.
    kv = jnp.dot(wkv_ref[...], x,
                 preferred_element_type=jnp.float32) + bkv_ref[...]
    keys = kv[:dim, :]                                            # (dim, Lt) f32
    values = kv[dim:, :]                                          # (dim, Lt) f32

    # Online softmax stats over the spatial axis.  The key softmax is per key
    # channel (row), independent of heads, so all dim rows are handled at once.
    m_old = m_sc[...]                                             # (dim, 1)
    m_new = jnp.maximum(m_old, jnp.max(keys, axis=1, keepdims=True))
    alpha = jnp.exp(m_old - m_new)                                # (dim, 1)
    p = jnp.exp(keys - m_new)                                     # (dim, Lt) f32
    l_sc[...] = alpha * l_sc[...] + jnp.sum(p, axis=1, keepdims=True)
    m_sc[...] = m_new
    acc_sc[...] = acc_sc[...] * alpha                             # rescale old ctx

    # Per-head context increment: ctx_h += P_h @ V_h^T  (trans_b via dot_general,
    # no materialized transpose; bf16 MXU operands, f32 accumulation).
    for h in range(head_count):
        p_h = p[h * hc:(h + 1) * hc, :].astype(jnp.bfloat16)
        v_h = values[h * hc:(h + 1) * hc, :].astype(jnp.bfloat16)
        inc = lax.dot_general(p_h, v_h,
                              dimension_numbers=(((1,), (1,)), ((), ())),
                              preferred_element_type=jnp.float32)  # (hc, hc)
        acc_sc[pl.ds(h * hc, hc), :] = acc_sc[pl.ds(h * hc, hc), :] + inc

    @pl.when(t == pl.num_programs(1) - 1)
    def _finalize():
        inv_l = pl.reciprocal(l_sc[...], approx=True)             # (dim, 1)
        ctx_ref[...] = (acc_sc[...] * inv_l)[None]


# --------------------------------------------------------------------------- #
# Pass 2: Q projection + channel softmax + attention + reprojection + residual
# --------------------------------------------------------------------------- #
def _attend_kernel(x_ref, wq_ref, bq_ref, ctx_ref, wr_ref, br_ref, o_ref, *,
                   dim, head_count):
    """x_ref: (1,C,Lt) bf16; wq_ref: (dim,C) bf16; bq_ref: (dim,1) f32;
    ctx_ref: (1,dim,hc) f32; wr_ref: (out_ch,dim) bf16; br_ref: (out_ch,1) f32;
    o_ref: (1,out_ch,Lt) f32."""
    hc = dim // head_count
    x = x_ref[0]                                                  # (C, Lt) bf16
    q = jnp.dot(wq_ref[...], x,
                preferred_element_type=jnp.float32) + bq_ref[...]  # (dim, Lt) f32
    ctx = ctx_ref[0]                                              # (dim, hc) f32
    wr = wr_ref[...]                                              # (out_ch, dim) bf16

    # Seed the reprojection accumulator with bias + residual (out_ch == C).
    acc = br_ref[...] + x.astype(jnp.float32)                     # (out_ch, Lt) f32

    for h in range(head_count):
        q_h = q[h * hc:(h + 1) * hc, :]                           # (hc, Lt) f32
        # Softmax over the head's channels (per spatial column), f32 math.
        q_h = q_h - jnp.max(q_h, axis=0, keepdims=True)
        e = jnp.exp(q_h)
        q_sm = e * pl.reciprocal(jnp.sum(e, axis=0, keepdims=True), approx=True)
        # att_h = ctx_h^T @ q_sm   (the tiny (hc,hc) transpose is cheap).
        ctx_h = ctx[h * hc:(h + 1) * hc, :]                       # (hc, hc) f32
        att = jnp.dot(ctx_h.T.astype(jnp.bfloat16), q_sm.astype(jnp.bfloat16),
                      preferred_element_type=jnp.float32)          # (hc, Lt) f32
        # Accumulate the reprojection head-by-head (no concat / agg buffer).
        acc = acc + jnp.dot(wr[:, h * hc:(h + 1) * hc], att.astype(jnp.bfloat16),
                            preferred_element_type=jnp.float32)

    o_ref[...] = acc[None].astype(o_ref.dtype)


# --------------------------------------------------------------------------- #
# Wrapper
# --------------------------------------------------------------------------- #
def _vmem_limit(byte_terms):
    est = int(sum(byte_terms)) + (4 << 20)     # headroom for temporaries / pipelining
    return min(max(est, 8 << 20), 64 << 20)    # never exceed v7x's 64 MiB physical VMEM


def efficient_attention(x_nchw, params, *, dim, head_count, l_tile=None):
    """x_nchw: (N, C, H, W) f32.  params: (wk, bk, wq, bq, wv, bv, wr, br)."""
    n, c, h, w = x_nchw.shape
    L = h * w
    wk, bk, wq, bq, wv, bv, wr, br = params
    out_ch = wr.shape[0]
    assert out_ch == c, "residual (reproj + x) requires out_channels == in_channels"
    assert dim % head_count == 0
    hc = dim // head_count
    assert hc % 8 == 0, "require dim % (8*head_count) == 0 (sublane-aligned head slices)"

    if l_tile is None:
        l_tile = next((t for t in (512, 256, 128) if L % t == 0), L)
    assert L % l_tile == 0 and (l_tile % 128 == 0 or l_tile == L)
    n_lt = L // l_tile

    # bf16 activations / weights in HBM (halves DMA, bf16 MXU operands);
    # biases stay f32 and are added onto the f32 accumulators.
    x = x_nchw.reshape(n, c, L).astype(jnp.bfloat16)
    wkv = jnp.concatenate([wk, wv], axis=0).astype(jnp.bfloat16)   # fused K/V weight
    bkv = jnp.concatenate([bk, bv], axis=0).astype(jnp.float32)
    wq_b, bq_f = wq.astype(jnp.bfloat16), bq.astype(jnp.float32)
    wr_b, br_f = wr.astype(jnp.bfloat16), br.astype(jnp.float32)

    # ---- pass 1: per-head contexts via online key-softmax over L tiles ----- #
    vmem_a = _vmem_limit([
        2 * c * l_tile * 2,                  # x block, double-buffered (bf16)
        2 * (2 * dim) * (c * 2 + 4),         # fused K/V weight + bias
        2 * dim * hc * 4,                    # ctx output block
        (2 * dim + dim * hc) * 4,            # m / l / acc scratch
        6 * dim * l_tile * 4,                # kv, p and elementwise temporaries
    ])
    ctx = pl.pallas_call(
        functools.partial(_context_kernel, dim=dim, head_count=head_count),
        out_shape=jax.ShapeDtypeStruct((n, dim, hc), jnp.float32),
        grid_spec=pltpu.PrefetchScalarGridSpec(
            num_scalar_prefetch=0,
            grid=(n, n_lt),
            in_specs=[
                pl.BlockSpec((1, c, l_tile), lambda b, t: (b, 0, t)),   # x
                pl.BlockSpec((2 * dim, c), lambda b, t: (0, 0)),        # wkv
                pl.BlockSpec((2 * dim, 1), lambda b, t: (0, 0)),        # bkv
            ],
            out_specs=pl.BlockSpec((1, dim, hc), lambda b, t: (b, 0, 0)),
            scratch_shapes=[
                pltpu.VMEM((dim, 1), jnp.float32),    # running max
                pltpu.VMEM((dim, 1), jnp.float32),    # running exp-sum
                pltpu.VMEM((dim, hc), jnp.float32),   # context accumulator
            ],
        ),
        compiler_params=pltpu.CompilerParams(
            dimension_semantics=("parallel", "arbitrary"),
            vmem_limit_bytes=vmem_a,
        ),
    )(x, wkv, bkv)

    # ---- pass 2: query softmax + attention + reprojection + residual -------- #
    vmem_b = _vmem_limit([
        2 * c * l_tile * 2,                  # x block (bf16)
        2 * dim * (c * 2 + 4),               # wq + bq
        2 * dim * hc * 4,                    # ctx block
        2 * out_ch * (dim * 2 + 4),          # wr + br
        2 * out_ch * l_tile * 4,             # output block, double-buffered
        6 * dim * l_tile * 4,                # q / softmax / att temporaries
    ])
    out = pl.pallas_call(
        functools.partial(_attend_kernel, dim=dim, head_count=head_count),
        out_shape=jax.ShapeDtypeStruct((n, out_ch, L), jnp.float32),
        grid_spec=pltpu.PrefetchScalarGridSpec(
            num_scalar_prefetch=0,
            grid=(n, n_lt),
            in_specs=[
                pl.BlockSpec((1, c, l_tile), lambda b, t: (b, 0, t)),   # x
                pl.BlockSpec((dim, c), lambda b, t: (0, 0)),            # wq
                pl.BlockSpec((dim, 1), lambda b, t: (0, 0)),            # bq
                pl.BlockSpec((1, dim, hc), lambda b, t: (b, 0, 0)),     # contexts
                pl.BlockSpec((out_ch, dim), lambda b, t: (0, 0)),       # wr
                pl.BlockSpec((out_ch, 1), lambda b, t: (0, 0)),         # br
            ],
            out_specs=pl.BlockSpec((1, out_ch, l_tile), lambda b, t: (b, 0, t)),
        ),
        compiler_params=pltpu.CompilerParams(
            dimension_semantics=("parallel", "parallel"),   # feeds both v7x TCs
            vmem_limit_bytes=vmem_b,
        ),
    )(x, wq_b, bq_f, ctx, wr_b, br_f)
    return out.reshape(n, out_ch, h, w)


# --------------------------------------------------------------------------- #
# Pure-JAX reference (mirrors the PyTorch module, f32 throughout)
# --------------------------------------------------------------------------- #
def reference(x_nchw, params, *, dim, head_count):
    n, c, h, w = x_nchw.shape
    L = h * w
    x = x_nchw.reshape(n, c, L).astype(jnp.float32)
    wk, bk, wq, bq, wv, bv, wr, br = params
    keys = jnp.einsum('oc,ncl->nol', wk, x) + bk[None]
    queries = jnp.einsum('oc,ncl->nol', wq, x) + bq[None]
    values = jnp.einsum('oc,ncl->nol', wv, x) + bv[None]
    hc = dim // head_count
    outs = []
    for i in range(head_count):
        k = jax.nn.softmax(keys[:, i * hc:(i + 1) * hc, :], axis=2)
        q = jax.nn.softmax(queries[:, i * hc:(i + 1) * hc, :], axis=1)
        v = values[:, i * hc:(i + 1) * hc, :]
        ctx = jnp.einsum('nkl,nvl->nkv', k, v)
        att = jnp.einsum('nkv,nkl->nvl', ctx, q)
        outs.append(att)
    agg = jnp.concatenate(outs, axis=1)
    reproj = jnp.einsum('od,ndl->nol', wr, agg) + br[None]
    return (reproj + x).reshape(n, -1, h, w)


def init_params(key, in_channels, dim, out_channels):
    ks = jax.random.split(key, 8)
    sc = 1.0 / np.sqrt(in_channels)
    sd = 1.0 / np.sqrt(dim)
    wk = jax.random.uniform(ks[0], (dim, in_channels), jnp.float32, -sc, sc)
    bk = jax.random.uniform(ks[1], (dim, 1), jnp.float32, -sc, sc)
    wq = jax.random.uniform(ks[2], (dim, in_channels), jnp.float32, -sc, sc)
    bq = jax.random.uniform(ks[3], (dim, 1), jnp.float32, -sc, sc)
    wv = jax.random.uniform(ks[4], (dim, in_channels), jnp.float32, -sc, sc)
    bv = jax.random.uniform(ks[5], (dim, 1), jnp.float32, -sc, sc)
    wr = jax.random.uniform(ks[6], (out_channels, dim), jnp.float32, -sd, sd)
    br = jax.random.uniform(ks[7], (out_channels, 1), jnp.float32, -sd, sd)
    return (wk, bk, wq, bq, wv, bv, wr, br)


if __name__ == "__main__":
    # small deterministic example; hc = DIM // HEADS = 16 (sublane aligned),
    # L = 256 with l_tile=128 -> exercises the multi-tile online key-softmax.
    N, C, H, W = 2, 8, 16, 16
    DIM, HEADS, OUT_C = 32, 2, 8      # DIM != OUT_C -> reprojection conv present

    key = jax.random.PRNGKey(0)
    kx, kp = jax.random.split(key)
    x = jax.random.normal(kx, (N, C, H, W), jnp.float32)
    params = init_params(kp, C, DIM, OUT_C)

    y = efficient_attention(x, params, dim=DIM, head_count=HEADS, l_tile=128)
    y = jax.block_until_ready(y)

    # The kernel runs bf16 matmul operands (f32 accumulation / f32 softmax), so
    # compare against the f32 reference evaluated on the same bf16-quantized
    # activations/weights, at a bf16-appropriate tolerance.
    q16 = lambda a: a.astype(jnp.bfloat16).astype(jnp.float32)
    wk, bk, wq, bq, wv, bv, wr, br = params
    params_q = (q16(wk), bk, q16(wq), bq, q16(wv), bv, q16(wr), br)
    y_ref = reference(q16(x), params_q, dim=DIM, head_count=HEADS)
    np.testing.assert_allclose(np.asarray(y), np.asarray(y_ref), rtol=3e-2, atol=3e-2)

    print("KERNEL_OK")
</pallas_src>

<mosaic_0001>
module attributes {stable_mosaic.version = 11 : i64} {
  func.func @_context_kernel(%arg0: i32, %arg1: i32, %arg2: memref<1x8x128xbf16, #tpu.memory_space<vmem>>, %arg3: memref<64x8xbf16, #tpu.memory_space<vmem>>, %arg4: memref<64x1xf32, #tpu.memory_space<vmem>>, %arg5: memref<1x32x16xf32, #tpu.memory_space<vmem>>, %arg6: memref<32x1xf32, #tpu.memory_space<vmem>>, %arg7: memref<32x1xf32, #tpu.memory_space<vmem>>, %arg8: memref<32x16xf32, #tpu.memory_space<vmem>>) attributes {dimension_semantics = [#tpu.dimension_semantics<parallel>, #tpu.dimension_semantics<arbitrary>], iteration_bounds = array<i64: 2, 2>, scalar_prefetch = 0 : i64, scratch_operands = 3 : i64, tpu.core_type = #tpu.core_type<tc>, window_params = [{transform_indices = @transform_0, window_bounds = array<i64: 1, 8, 128>}, {pipeline_mode = #tpu.pipeline_mode<synchronous>, transform_indices = @transform_1, window_bounds = array<i64: 64, 8>}, {pipeline_mode = #tpu.pipeline_mode<synchronous>, transform_indices = @transform_2, window_bounds = array<i64: 64, 1>}, {transform_indices = @transform_3, window_bounds = array<i64: 1, 32, 16>}]} {
    %c0_i32 = arith.constant 0 : i32
    %0 = arith.cmpi eq, %arg1, %c0_i32 : i32
    %1 = arith.extui %0 : i1 to i32
    %c0_i32_0 = arith.constant 0 : i32
    %2 = arith.cmpi ne, %1, %c0_i32_0 : i32
    scf.if %2 {
      %cst_31 = arith.constant 0xFF800000 : f32
      %51 = vector.broadcast %cst_31 : f32 to vector<32x1xf32>
      %c0_32 = arith.constant 0 : index
      %c0_33 = arith.constant 0 : index
      %52 = vector.load %arg6[%c0_32, %c0_33] : memref<32x1xf32, #tpu.memory_space<vmem>>, vector<32x1xf32>
      tpu.vector_store %arg6[%c0_32, %c0_33], %51 {strides = array<i32>} : memref<32x1xf32, #tpu.memory_space<vmem>>, vector<32x1xf32>,
      %cst_34 = arith.constant 0.000000e+00 : f32
      %53 = vector.broadcast %cst_34 : f32 to vector<32x1xf32>
      %c0_35 = arith.constant 0 : index
      %c0_36 = arith.constant 0 : index
      %54 = vector.load %arg7[%c0_35, %c0_36] : memref<32x1xf32, #tpu.memory_space<vmem>>, vector<32x1xf32>
      tpu.vector_store %arg7[%c0_35, %c0_36], %53 {strides = array<i32>} : memref<32x1xf32, #tpu.memory_space<vmem>>, vector<32x1xf32>,
      %cst_37 = arith.constant 0.000000e+00 : f32
      %55 = vector.broadcast %cst_37 : f32 to vector<32x16xf32>
      %c0_38 = arith.constant 0 : index
      %c0_39 = arith.constant 0 : index
      %56 = vector.load %arg8[%c0_38, %c0_39] : memref<32x16xf32, #tpu.memory_space<vmem>>, vector<32x16xf32>
      tpu.vector_store %arg8[%c0_38, %c0_39], %55 {strides = array<i32>} : memref<32x16xf32, #tpu.memory_space<vmem>>, vector<32x16xf32>,
    } else {
    }
    %c0 = arith.constant 0 : index
    %c0_1 = arith.constant 0 : index
    %c0_2 = arith.constant 0 : index
    %3 = vector.load %arg2[%c0, %c0_1, %c0_2] : memref<1x8x128xbf16, #tpu.memory_space<vmem>>, vector<1x8x128xbf16>
    %4 = vector.shape_cast %3 : vector<1x8x128xbf16> to vector<8x128xbf16>
    %c0_3 = arith.constant 0 : index
    %c0_4 = arith.constant 0 : index
    %5 = vector.load %arg3[%c0_3, %c0_4] : memref<64x8xbf16, #tpu.memory_space<vmem>>, vector<64x8xbf16>
    %cst = arith.constant dense<0.000000e+00> : vector<64x128xf32>
    %6 = tpu.matmul %5, %4, %cst {dimension_numbers = #tpu.dot_dimension_numbers<[1], [0], [0], [1], [0, 0, 1, 1], [], []>} : vector<64x8xbf16>, vector<8x128xbf16>, vector<64x128xf32> -> vector<64x128xf32>
    %c0_5 = arith.constant 0 : index
    %c0_6 = arith.constant 0 : index
    %7 = vector.load %arg4[%c0_5, %c0_6] : memref<64x1xf32, #tpu.memory_space<vmem>>, vector<64x1xf32>
    %8 = vector.broadcast %7 : vector<64x1xf32> to vector<64x128xf32>
    %9 = arith.addf %6, %8 : vector<64x128xf32>
    %10 = vector.extract_strided_slice %9 {offsets = [0, 0], sizes = [32, 128], strides = [1, 1]} : vector<64x128xf32> to vector<32x128xf32>
    %11 = vector.extract_strided_slice %9 {offsets = [32, 0], sizes = [32, 128], strides = [1, 1]} : vector<64x128xf32> to vector<32x128xf32>
    %c0_7 = arith.constant 0 : index
    %c0_8 = arith.constant 0 : index
    %12 = vector.load %arg6[%c0_7, %c0_8] : memref<32x1xf32, #tpu.memory_space<vmem>>, vector<32x1xf32>
    %cst_9 = arith.constant dense<0xFF800000> : vector<32xf32>
    %13 = vector.multi_reduction <maximumf>, %10, %cst_9 [1] : vector<32x128xf32> to vector<32xf32>
    %14 = vector.shape_cast %13 : vector<32xf32> to vector<32x1xf32>
    %15 = arith.maximumf %12, %14 : vector<32x1xf32>
    %16 = arith.subf %12, %15 : vector<32x1xf32>
    %17 = math.exp %16 : vector<32x1xf32>
    %18 = vector.broadcast %15 : vector<32x1xf32> to vector<32x128xf32>
    %19 = arith.subf %10, %18 : vector<32x128xf32>
    %20 = math.exp %19 : vector<32x128xf32>
    %c0_10 = arith.constant 0 : index
    %c0_11 = arith.constant 0 : index
    %21 = vector.load %arg7[%c0_10, %c0_11] : memref<32x1xf32, #tpu.memory_space<vmem>>, vector<32x1xf32>
    %22 = arith.mulf %17, %21 : vector<32x1xf32>
    %cst_12 = arith.constant dense<0.000000e+00> : vector<32xf32>
    %23 = vector.multi_reduction <add>, %20, %cst_12 [1] : vector<32x128xf32> to vector<32xf32>
    %24 = vector.shape_cast %23 : vector<32xf32> to vector<32x1xf32>
    %25 = arith.addf %22, %24 : vector<32x1xf32>
    %c0_13 = arith.constant 0 : index
    %c0_14 = arith.constant 0 : index
    %26 = vector.load %arg7[%c0_13, %c0_14] : memref<32x1xf32, #tpu.memory_space<vmem>>, vector<32x1xf32>
    tpu.vector_store %arg7[%c0_13, %c0_14], %25 {strides = array<i32>} : memref<32x1xf32, #tpu.memory_space<vmem>>, vector<32x1xf32>,
    %c0_15 = arith.constant 0 : index
    %c0_16 = arith.constant 0 : index
    %27 = vector.load %arg6[%c0_15, %c0_16] : memref<32x1xf32, #tpu.memory_space<vmem>>, vector<32x1xf32>
    tpu.vector_store %arg6[%c0_15, %c0_16], %15 {strides = array<i32>} : memref<32x1xf32, #tpu.memory_space<vmem>>, vector<32x1xf32>,
    %c0_17 = arith.constant 0 : index
    %c0_18 = arith.constant 0 : index
    %28 = vector.load %arg8[%c0_17, %c0_18] : memref<32x16xf32, #tpu.memory_space<vmem>>, vector<32x16xf32>
    %29 = vector.broadcast %17 : vector<32x1xf32> to vector<32x16xf32>
    %30 = arith.mulf %28, %29 : vector<32x16xf32>
    %c0_19 = arith.constant 0 : index
    %c0_20 = arith.constant 0 : index
    %31 = vector.load %arg8[%c0_19, %c0_20] : memref<32x16xf32, #tpu.memory_space<vmem>>, vector<32x16xf32>
    tpu.vector_store %arg8[%c0_19, %c0_20], %30 {strides = array<i32>} : memref<32x16xf32, #tpu.memory_space<vmem>>, vector<32x16xf32>,
    %32 = vector.extract_strided_slice %20 {offsets = [0, 0], sizes = [16, 128], strides = [1, 1]} : vector<32x128xf32> to vector<16x128xf32>
    %33 = arith.truncf %32 : vector<16x128xf32> to vector<16x128xbf16>
    %34 = vector.extract_strided_slice %11 {offsets = [0, 0], sizes = [16, 128], strides = [1, 1]} : vector<32x128xf32> to vector<16x128xf32>
    %35 = arith.truncf %34 : vector<16x128xf32> to vector<16x128xbf16>
    %cst_21 = arith.constant dense<0.000000e+00> : vector<16x16xf32>
    %36 = tpu.matmul %33, %35, %cst_21 {dimension_numbers = #tpu.dot_dimension_numbers<[1], [1], [0], [0], [0, 0, 1, 0], [], []>} : vector<16x128xbf16>, vector<16x128xbf16>, vector<16x16xf32> -> vector<16x16xf32>
    %c0_22 = arith.constant 0 : index
    %c0_23 = arith.constant 0 : index
    %37 = vector.load %arg8[%c0_22, %c0_23] : memref<32x16xf32, #tpu.memory_space<vmem>>, vector<16x16xf32>
    %38 = arith.addf %37, %36 : vector<16x16xf32>
    %c0_24 = arith.constant 0 : index
    %c0_25 = arith.constant 0 : index
    %39 = vector.load %arg8[%c0_24, %c0_25] : memref<32x16xf32, #tpu.memory_space<vmem>>, vector<16x16xf32>
    tpu.vector_store %arg8[%c0_24, %c0_25], %38 {strides = array<i32>} : memref<32x16xf32, #tpu.memory_space<vmem>>, vector<16x16xf32>,
    %40 = vector.extract_strided_slice %20 {offsets = [16, 0], sizes = [16, 128], strides = [1, 1]} : vector<32x128xf32> to vector<16x128xf32>
    %41 = arith.truncf %40 : vector<16x128xf32> to vector<16x128xbf16>
    %42 = vector.extract_strided_slice %11 {offsets = [16, 0], sizes = [16, 128], strides = [1, 1]} : vector<32x128xf32> to vector<16x128xf32>
    %43 = arith.truncf %42 : vector<16x128xf32> to vector<16x128xbf16>
    %cst_26 = arith.constant dense<0.000000e+00> : vector<16x16xf32>
    %44 = tpu.matmul %41, %43, %cst_26 {dimension_numbers = #tpu.dot_dimension_numbers<[1], [1], [0], [0], [0, 0, 1, 0], [], []>} : vector<16x128xbf16>, vector<16x128xbf16>, vector<16x16xf32> -> vector<16x16xf32>
    %c16 = arith.constant 16 : index
    %c0_27 = arith.constant 0 : index
    %45 = vector.load %arg8[%c16, %c0_27] : memref<32x16xf32, #tpu.memory_space<vmem>>, vector<16x16xf32>
    %46 = arith.addf %45, %44 : vector<16x16xf32>
    %c16_28 = arith.constant 16 : index
    %c0_29 = arith.constant 0 : index
    %47 = vector.load %arg8[%c16_28, %c0_29] : memref<32x16xf32, #tpu.memory_space<vmem>>, vector<16x16xf32>
    tpu.vector_store %arg8[%c16_28, %c0_29], %46 {strides = array<i32>} : memref<32x16xf32, #tpu.memory_space<vmem>>, vector<16x16xf32>,
    %c1_i32 = arith.constant 1 : i32
    %48 = arith.cmpi eq, %arg1, %c1_i32 : i32
    %49 = arith.extui %48 : i1 to i32
    %c0_i32_30 = arith.constant 0 : i32
    %50 = arith.cmpi ne, %49, %c0_i32_30 : i32
    scf.if %50 {
      %c0_31 = arith.constant 0 : index
      %c0_32 = arith.constant 0 : index
      %51 = vector.load %arg7[%c0_31, %c0_32] : memref<32x1xf32, #tpu.memory_space<vmem>>, vector<32x1xf32>
      %52 = tpu.reciprocal %51 {approx = true} : vector<32x1xf32> -> vector<32x1xf32>
      %c0_33 = arith.constant 0 : index
      %c0_34 = arith.constant 0 : index
      %53 = vector.load %arg8[%c0_33, %c0_34] : memref<32x16xf32, #tpu.memory_space<vmem>>, vector<32x16xf32>
      %54 = vector.broadcast %52 : vector<32x1xf32> to vector<32x16xf32>
      %55 = arith.mulf %53, %54 : vector<32x16xf32>
      %56 = vector.shape_cast %55 : vector<32x16xf32> to vector<1x32x16xf32>
      %c0_35 = arith.constant 0 : index
      %c0_36 = arith.constant 0 : index
      %c0_37 = arith.constant 0 : index
      %57 = vector.load %arg5[%c0_35, %c0_36, %c0_37] : memref<1x32x16xf32, #tpu.memory_space<vmem>>, vector<1x32x16xf32>
      tpu.vector_store %arg5[%c0_35, %c0_36, %c0_37], %56 {strides = array<i32>} : memref<1x32x16xf32, #tpu.memory_space<vmem>>, vector<1x32x16xf32>,
    } else {
    }
    return
  }
  func.func @transform_0(%arg0: i32, %arg1: i32) -> (i32, i32, i32) {
    %c0_i32 = arith.constant 0 : i32
    %c0_i32_0 = arith.constant 0 : i32
    return %arg0, %c0_i32, %arg1 : i32, i32, i32
  }
  func.func @transform_1(%arg0: i32, %arg1: i32) -> (i32, i32) {
    %c0_i32 = arith.constant 0 : i32
    %c0_i32_0 = arith.constant 0 : i32
    %c0_i32_1 = arith.constant 0 : i32
    return %c0_i32, %c0_i32_0 : i32, i32
  }
  func.func @transform_2(%arg0: i32, %arg1: i32) -> (i32, i32) {
    %c0_i32 = arith.constant 0 : i32
    %c0_i32_0 = arith.constant 0 : i32
    %c0_i32_1 = arith.constant 0 : i32
    return %c0_i32, %c0_i32_0 : i32, i32
  }
  func.func @transform_3(%arg0: i32, %arg1: i32) -> (i32, i32, i32) {
    %c0_i32 = arith.constant 0 : i32
    %c0_i32_0 = arith.constant 0 : i32
    %c0_i32_1 = arith.constant 0 : i32
    return %arg0, %c0_i32, %c0_i32_0 : i32, i32, i32
  }
}

</mosaic_0001>

<bundles_post_ra>
// kernel: tpu_custom_call.1
= control target key start
LH: loop header
LB: loop body
LE: loop exit
PB: predicated region body
PF: predicated region fallthrough
CT: control target
= control target key end

     0   :  { %s906_s12 = smov 0   ;;  %s908_s13 = smov 0   ;;  %s1067_s0 = inlined_call_operand.vmem [shape: bf16[2,8,256], index: 0, kind: input, shape index: {}]   ;;  %s1068_s1 = inlined_call_operand.vmem [shape: bf16[64,8], index: 1, kind: input, shape index: {}]   ;;  %s1069_s2 = inlined_call_operand.vmem [shape: f32[64,1], index: 2, kind: input, shape index: {}]   ;;  %s1070_s3 = inlined_call_operand.vmem [shape: f32[2,32,16], index: 3, kind: output, shape index: {}]  }
   0x1   :  { %s910_s14 = smov 0   ;;  %s912_s15 = smov 0  }
   0x2   :  { %s914_s16 = smov 0  }
   0x3 LB: > { %s22_s17 = sadd.s32 1, %s870_s14  ;;  %s25_s18 = sadd.s32 1, %s874_s15  ;;  %s878_s16 = sphi %s914_s16, %s13_s16   ;;  %s874_s15 = sphi %s912_s15, %s1074_s15   ;;  %s870_s14 = sphi %s910_s14, %s1073_s14   ;;  %s866_s13 = sphi %s908_s13, %s1072_s13   ;;  %s862_s12 = sphi %s906_s12, %s1071_s12  }
   0x4   : > { %p23_p0 = scmp.ge.s32.totalorder %s22_s17, 2  ;;  %p712_p1 = scmp.ge.s32.totalorder %s878_s16, 1 }
   0x5   : > { %p154_p2 = scmp.lt.s32.totalorder %s878_s16, 5 }
   0x6   : > { %s1076_s17 = smov (%p23_p0, %s22_s17), 0  ;;  %s1078_s18 = smov (!%p23_p0, %s25_s18), %s874_s15 }
   0x7   : > { %p155_p3 = pnand %p712_p1, %p154_p2  ;;  %p27_p4 = scmp.ge.s32.totalorder %s1078_s18, 2 }
   0x8   : > { %p181_p5 = scmp.lt.s32.totalorder (!%p155_p3), %s866_s13, 1  ;;  %p183_p6 = scmp.lt.s32.totalorder (!%p155_p3), %s862_s12, 1 }
   0x9   : > { %s1080_s18 = smov (%p27_p4, %s1078_s18), 0  ;;  %158 = sbr.rel (%p155_p3) target bundleno = 876 (0x36c), region = 32 }
   0xa   : > { %p717_p7 = scmp.ne.s32.totalorder (!%p155_p3), %s862_s12, 0 }
   0xe   : > { %s1082_s13 = smov (!%p181_p5, %s866_s13), 1 }
   0xf   : > { %s184_s19 = scalar_select %p183_p6, %s862_s12, 1 }
  0x10   : > { %s713_s20 = sshll.u32 %s1082_s13, 1  ;;  %s729_s21 = sshll.u32 %s1082_s13, 5 }
  0x11   : > { %s186_s22 = sadd.s32 %s713_s20, %s184_s19  ;;  %s943_s25 = scalar_lea.vmem %s1070_s3, %s729_s21 }
  0x12   : > { %s714_s26 = sshll.u32 %s186_s22, 2  ;;  %198 = sbr.rel (%p717_p7) target bundleno = 30 (0x1e), region = 36 }
  0x13   : > { %s188_s29 = scalar_lea.vmem %s1067_s0, %s714_s26 }
  0x17   : > { %vm199_vm0 = vcmask 7168   ;;  %vm208_vm1 = vcmask 130048   ;;  %v880_v0 = vmov -inf   ;;  %v881_v1 = vmov 0.0  }
  0x18   : > { %200 = vst.msk [vmem:[#allocation2] sm:$0xff] %vm199_vm0, %v880_v0  ;;  %201 = vst.msk [vmem:[#allocation2 + $0x8] sm:$0xff] %vm199_vm0, %v880_v0 }
  0x19   : > { %202 = vst.msk [vmem:[#allocation2 + $0x10] sm:$0xff] %vm199_vm0, %v880_v0  ;;  %203 = vst.msk [vmem:[#allocation2 + $0x18] sm:$0xff] %vm199_vm0, %v880_v0 }
  0x1a   : > { %204 = vst.msk [vmem:[#allocation3] sm:$0xff] %vm199_vm0, %v881_v1  ;;  %205 = vst.msk [vmem:[#allocation3 + $0x8] sm:$0xff] %vm199_vm0, %v881_v1 }
  0x1b   : > { %206 = vst.msk [vmem:[#allocation3 + $0x10] sm:$0xff] %vm199_vm0, %v881_v1  ;;  %207 = vst.msk [vmem:[#allocation3 + $0x18] sm:$0xff] %vm199_vm0, %v881_v1 }
  0x1c   : > { %209 = vst.msk [vmem:[#allocation4] sm:$0xff] %vm208_vm1, %v881_v1  ;;  %210 = vst.msk [vmem:[#allocation4 + $0x8] sm:$0xff] %vm208_vm1, %v881_v1 }
  0x1d   : > { %211 = vst.msk [vmem:[#allocation4 + $0x10] sm:$0xff] %vm208_vm1, %v881_v1  ;;  %212 = vst.msk [vmem:[#allocation4 + $0x18] sm:$0xff] %vm208_vm1, %v881_v1 }
  0x1e PF: > { %v213_v2 = vld [vmem:[%s188_s29] sm:$0xf]  ;;  %vm303_vm2 = vcmask 1043456   ;;  %vm290_vm3 = vcmask 64512   ;;  %v811_v5 = vld [vmem:[%s1068_s1 + $0x8] sm:$0xff]   ;;  %v882_v7 = vmov 0  }
  0x1f   : > { %v810_v3 = vld [vmem:[%s1068_s1] sm:$0xff]   ;;  %761 = vmatprep.subr.msk.bf16.mxu0 %vm303_vm2, %v213_v2  ;;  %v305_v4 = vsel %vm303_vm2, %v213_v2, 0  ;;  %808 = vset.pattern.permute.xlu0 %v882_v7  ;;  %v224_v8 = vld [vmem:[%s1069_s2 + $0x10] sm:$0xff]  ;;  %v223_v9 = vld [vmem:[%s1069_s2 + $0x8] sm:$0xff]  ;;  %vm452_vm4 = vcmask 7168   ;;  %v883_v46 = vmov 0.0  }
  0x20   : > { %740 = vmatpush3.bf16.msra.mxu0 %v305_v4  ;;  %741 = vmatprep.mubr.msk.bf16.mxu0 %vm290_vm3, %v810_v3  ;;  %v222_v6 = vld [vmem:[%s1069_s2] sm:$0xff]  ;;  %v225_v10 = vld [vmem:[%s1069_s2 + $0x18] sm:$0xff]  ;;  %v812_v11 = vld [vmem:[%s1068_s1 + $0x10] sm:$0xff]   ;;  %vm884_vm5 = vmmov 0   ;;  %vm489_vm6 = vcmask 130048   ;;  %p726_p8 = scmp.ne.s32.totalorder %s862_s12, 1 }
  0x21   : > { %809 = vset.pattern.permute.xlu1 %v882_v7  ;;  %232 = vperm.xlu0 %808, %v222_v6   ;;  %v813_v12 = vld [vmem:[%s1068_s1 + $0x18] sm:$0xff]   ;;  %v372_v25 = vld [vmem:[#allocation2] sm:$0xff]  ;;  %v373_v28 = vld [vmem:[#allocation2 + $0x8] sm:$0xff] }
  0x22   : > { %242 = vperm.xlu1 %809, %v224_v8   ;;  %v374_v29 = vld [vmem:[#allocation2 + $0x10] sm:$0xff]  ;;  %v375_v34 = vld [vmem:[#allocation2 + $0x18] sm:$0xff]  ;;  %v226_v38 = vld [vmem:[%s1069_s2 + $0x20] sm:$0xff]  ;;  %749 = vmatprep.subr.bf16.mxu1 %v883_v46 }
  0x23   : > { %742 = vmatmul.mubr.msk.bf16.vlgmr.msra.gmra.mxu0 %vm290_vm3, %v811_v5  ;;  %v228_v44 = vld [vmem:[%s1069_s2 + $0x30] sm:$0xff]  ;;  %v227_v45 = vld [vmem:[%s1069_s2 + $0x28] sm:$0xff]  ;;  %v229_v49 = vld [vmem:[%s1069_s2 + $0x38] sm:$0xff]  ;;  %751 = vmatprep.mubr.msk.bf16.mxu1 %vm884_vm5, %v883_v46 }
  0x24   : > { %745 = vmatprep.mubr.msk.bf16.mxu0 %vm290_vm3, %v812_v11 }
  0x25   : > { %237 = vperm.xlu0 %808, %v223_v9  }
  0x26   : > { %247 = vperm.xlu1 %809, %v225_v10  }
  0x2b   : > { %746 = vmatmul.mubr.msk.bf16.gmra.mxu0 %vm290_vm3, %v813_v12 }
  0x9c   : > { %v233_v13 = vpop.permute.xlu0 %232 }
  0x9d   : > { %v243_v15 = vpop.permute.xlu1 %242 }
  0xa0   : > { %v238_v19 = vpop.permute.xlu0 %237 }
  0xa1   : > { %v248_v23 = vpop.permute.xlu1 %247 }
  0xe3   : > { %v743_v14 = vpop.f32.mrf.mxu0 }
  0xe4   : > { %v980_v21 = vadd.f32 %v743_v14, %v243_v15  ;;  %v463_v15 = vld [vmem:[#allocation4 + $0x10] sm:$0xff] }
  0xe5   : > { %v341_v16 = vpop.f32.mrf.mxu0 }
  0xe6   : > { %v977_v17 = vadd.f32 %v341_v16, %v233_v13 }
  0xe7   : > { %v744_v18 = vpop.f32.mrf.mxu0 }
  0xe8   : > { %376 = vmax.xlane.f32.xlu0 %v977_v17  ;;  %v986_v24 = vadd.f32 %v744_v18, %v248_v23 }
  0xe9   : > { %v344_v20 = vpop.f32.mrf.mxu0 }
  0xea   : > { %v982_v22 = vadd.f32 %v344_v20, %v238_v19 }
  0xeb   : > { %v747_v54 = vpop.f32.mrf.mxu0 }
  0xec   : > { %378 = vmax.xlane.f32.xlu1 %v982_v22  ;;  %380 = vmax.xlane.f32.xlu0 %v980_v21 }
  0xed   : > { %v357_v58 = vpop.f32.mrf.mxu0 }
  0xef   : > { %v748_v1 = vpop.f32.mrf.mxu0 }
  0xf0   : > { %382 = vmax.xlane.f32.xlu0 %v986_v24 }
  0xf1   : > { %v360_v6 = vpop.f32.mrf.mxu0 }
 0x171   : > { %v377_v26 = vpop.xlane.xlu0 %376 }
 0x172   : > { %v384_v27 = vmax.f32 %v372_v25, %v377_v26 }
 0x174   : > { %457 = vst.msk [vmem:[#allocation2] sm:$0xff] %vm452_vm4, %v384_v27  ;;  %402 = vperm.xlu1 %809, %v384_v27   ;;  %v388_v36 = vsub.f32 %v372_v25, %v384_v27 }
 0x175   : > { %v379_v30 = vpop.xlane.xlu1 %378  ;;  %v381_v31 = vpop.xlane.xlu0 %380 }
 0x176   : > { %v385_v32 = vmax.f32 %v373_v28, %v379_v30  ;;  %v386_v33 = vmax.f32 %v374_v29, %v381_v31  ;;  %v392_v43 = vmul.f32 1.442695, %v388_v36  ;;  %v462_v30 = vld [vmem:[#allocation4 + $0x8] sm:$0xff] }
 0x178   : > { %458 = vst.msk [vmem:[#allocation2 + $0x8] sm:$0xff] %vm452_vm4, %v385_v32  ;;  %v390_v35 = vsub.f32 %v374_v29, %v386_v33  ;;  %459 = vst.msk [vmem:[#allocation2 + $0x10] sm:$0xff] %vm452_vm4, %v386_v33  ;;  %407 = vperm.xlu0 %808, %v385_v32   ;;  %412 = vperm.xlu1 %809, %v386_v33   ;;  %v389_v41 = vsub.f32 %v373_v28, %v385_v32 }
 0x179   : > { %v383_v37 = vpop.xlane.xlu0 %382 }
 0x17a   : > { %v396_v39 = vmul.f32 1.442695, %v390_v35  ;;  %v387_v40 = vmax.f32 %v375_v34, %v383_v37  ;;  %v394_v48 = vmul.f32 1.442695, %v389_v41  ;;  %v434_v37 = vld [vmem:[#allocation3 + $0x10] sm:$0xff] }
 0x17c   : > { %v391_v42 = vsub.f32 %v375_v34, %v387_v40  ;;  %460 = vst.msk [vmem:[#allocation2 + $0x18] sm:$0xff] %vm452_vm4, %v387_v40  ;;  %252 = vperm.xlu0 %808, %v226_v38   ;;  %417 = vperm.xlu1 %809, %v387_v40   ;;  %814 = vpow2.f32 %v396_v39  ;;  %v432_v34 = vld [vmem:[#allocation3] sm:$0xff]  ;;  %v433_v39 = vld [vmem:[#allocation3 + $0x8] sm:$0xff] }
 0x17e   : > { %v398_v47 = vmul.f32 1.442695, %v391_v42 }
 0x180   : > { %816 = vpow2.f32 %v398_v47  ;;  %262 = vperm.xlu0 %808, %v228_v44   ;;  %257 = vperm.xlu1 %809, %v227_v45  }
 0x181   : > { %818 = vpow2.f32 %v392_v43  ;;  %v435_v43 = vld [vmem:[#allocation3 + $0x18] sm:$0xff] }
 0x182   : > { %820 = vpow2.f32 %v394_v48 }
 0x184   : > { %267 = vperm.xlu1 %809, %v229_v49  }
 0x189   : > { %v1008_v50 = vpop.eup %814 }
 0x18a   : > { %477 = vperm.xlu0 %808, %v1008_v50   ;;  %v438_v40 = vmul.f32 %v1008_v50, %v434_v37 }
 0x18d   : > { %v1011_v51 = vpop.eup %816 }
 0x18e   : > { %v1013_v52 = vpop.eup %818  ;;  %482 = vperm.xlu1 %809, %v1011_v51   ;;  %v439_v47 = vmul.f32 %v1011_v51, %v435_v43 }
 0x18f   : > { %467 = vperm.xlu0 %808, %v1013_v52   ;;  %v1017_v53 = vpop.eup %820  ;;  %v436_v35 = vmul.f32 %v1013_v52, %v432_v34 }
 0x190   : > { %v437_v41 = vmul.f32 %v1017_v53, %v433_v39 }
 0x192   : > { %472 = vperm.xlu1 %809, %v1017_v53  }
 0x1ef   : > { %v403_v55 = vpop.permute.xlu1 %402 }
 0x1f0   : > { %v420_v56 = vsub.f32 %v977_v17, %v403_v55 }
 0x1f2   : > { %v424_v57 = vmul.f32 1.442695, %v420_v56 }
 0x1f3   : > { %v413_v59 = vpop.permute.xlu1 %412  ;;  %v408_v60 = vpop.permute.xlu0 %407 }
 0x1f4   : > { %822 = vpow2.f32 %v424_v57  ;;  %v422_v61 = vsub.f32 %v980_v21, %v413_v59  ;;  %v421_v62 = vsub.f32 %v982_v22, %v408_v60  ;;  %v464_v22 = vld [vmem:[#allocation4 + $0x18] sm:$0xff] }
 0x1f6   : > { %v428_v63 = vmul.f32 1.442695, %v422_v61  ;;  %v426_v0 = vmul.f32 1.442695, %v421_v62 }
 0x1f7   : > { %v418_v2 = vpop.permute.xlu1 %417  ;;  %v253_v4 = vpop.permute.xlu0 %252 }
 0x1f8   : > { %824 = vpow2.f32 %v428_v63  ;;  %v423_v3 = vsub.f32 %v986_v24, %v418_v2  ;;  %v358_v8 = vadd.f32 %v357_v58, %v253_v4  ;;  %v461_v24 = vld [vmem:[#allocation4] sm:$0xff] }
 0x1f9   : > { %826 = vpow2.f32 %v426_v0 }
 0x1fa   : > { %v430_v5 = vmul.f32 1.442695, %v423_v3 }
 0x1fb   : > { %v258_v7 = vpop.permute.xlu1 %257  ;;  %v263_v13 = vpop.permute.xlu0 %262 }
 0x1fc   : > { %828 = vpow2.f32 %v430_v5  ;;  %v361_v9 = vadd.f32 %v360_v6, %v258_v7  ;;  %v366_v18 = vadd.f32 %v747_v54, %v263_v13 }
 0x1fe   : > { %v495_v10 = vpack.c.bf16 %v361_v9, %v358_v8 }
 0x1ff   : > { %v268_v12 = vpop.permute.xlu1 %267 }
 0x200   : > { %750 = vmatpush3.bf16.xpose.msra.mxu1 %v495_v10  ;;  %v369_v14 = vadd.f32 %v748_v1, %v268_v12 }
 0x201   : > { %v823_v11 = vpop.eup %822  ;;  %755 = vmatprep.subr.bf16.mxu1 %v883_v46 }
 0x202   : > { %440 = vadd.xlane.f32.xlu0 %v823_v11  ;;  %v544_v23 = vpack.c.bf16 %v369_v14, %v366_v18 }
 0x205   : > { %v825_v16 = vpop.eup %824  ;;  %v478_v19 = vpop.permute.xlu0 %477 }
 0x206   : > { %v827_v17 = vpop.eup %826  ;;  %444 = vadd.xlane.f32.xlu0 %v825_v16  ;;  %v487_v20 = vmul.f32 %v478_v19, %v463_v15 }
 0x207   : > { %442 = vadd.xlane.f32.xlu1 %v827_v17  ;;  %v494_v21 = vpack.c.bf16 %v827_v17, %v823_v11 }
 0x208   : > { %492 = vst.msk [vmem:[#allocation4 + $0x10] sm:$0xff] %vm489_vm6, %v487_v20 }
 0x209   : > { %v829_v25 = vpop.eup %828  ;;  %752 = vmatmul.mubr.bf16.vlgmr.msra.gmra.mxu1 %v494_v21  ;;  %v483_v26 = vpop.permute.xlu1 %482 }
 0x20a   : > { %756 = vmatpush3.bf16.xpose.msra.mxu1 %v544_v23  ;;  %v488_v27 = vmul.f32 %v483_v26, %v464_v22  ;;  %v468_v28 = vpop.permute.xlu0 %467  ;;  %446 = vadd.xlane.f32.xlu0 %v829_v25  ;;  %v543_v33 = vpack.c.bf16 %v829_v25, %v825_v16 }
 0x20b   : > { %v485_v29 = vmul.f32 %v468_v28, %v461_v24  ;;  %757 = vmatprep.mubr.msk.bf16.mxu1 %vm884_vm5, %v883_v46 }
 0x20c   : > { %493 = vst.msk [vmem:[#allocation4 + $0x18] sm:$0xff] %vm489_vm6, %v488_v27 }
 0x20d   : > { %490 = vst.msk [vmem:[#allocation4] sm:$0xff] %vm489_vm6, %v485_v29  ;;  %v473_v31 = vpop.permute.xlu1 %472 }
 0x20e   : > { %v486_v32 = vmul.f32 %v473_v31, %v462_v30 }
 0x20f   : > { %v586_v51 = vld [vmem:[#allocation4 + $0x10] sm:$0xff] }
 0x210   : > { %491 = vst.msk [vmem:[#allocation4 + $0x8] sm:$0xff] %vm489_vm6, %v486_v32 }
 0x211   : > { %758 = vmatmul.mubr.bf16.vlgmr.msra.gmra.mxu1 %v543_v33 }
 0x213   : > { %v587_v63 = vld [vmem:[#allocation4 + $0x18] sm:$0xff] }
 0x214   : > { %v537_v54 = vld [vmem:[#allocation4] sm:$0xff] }
 0x217   : > { %v538_v56 = vld [vmem:[#allocation4 + $0x8] sm:$0xff] }
 0x28b   : > { %v441_v36 = vpop.xlane.xlu0 %440 }
 0x28c   : > { %v448_v38 = vadd.f32 %v441_v36, %v436_v35 }
 0x28e   : > { %453 = vst.msk [vmem:[#allocation3] sm:$0xff] %vm452_vm4, %v448_v38 }
 0x28f   : > { %v445_v42 = vpop.xlane.xlu0 %444 }
 0x290   : > { %v443_v44 = vpop.xlane.xlu1 %442  ;;  %v450_v45 = vadd.f32 %v445_v42, %v438_v40 }
 0x291   : > { %v449_v46 = vadd.f32 %v443_v44, %v437_v41 }
 0x292   : > { %455 = vst.msk [vmem:[#allocation3 + $0x10] sm:$0xff] %vm452_vm4, %v450_v45 }
 0x293   : > { %454 = vst.msk [vmem:[#allocation3 + $0x8] sm:$0xff] %vm452_vm4, %v449_v46  ;;  %v447_v48 = vpop.xlane.xlu0 %446 }
 0x294   : > { %v451_v49 = vadd.f32 %v447_v48, %v439_v47 }
 0x296   : > { %456 = vst.msk [vmem:[#allocation3 + $0x18] sm:$0xff] %vm452_vm4, %v451_v49 }
 0x2c9   : > { %v530_v52 = vpop.f32.mrf.mxu1 }
 0x2ca   : > { %v539_v50 = vadd.f32 %v537_v54, %v530_v52 }
 0x2cb   : > { %v753_v55 = vpop.f32.mrf.mxu1 }
 0x2cc   : > { %541 = vst.msk [vmem:[#allocation4] sm:$0xff] %vm489_vm6, %v539_v50 }
 0x2cd   : > { %v533_v53 = vpop.f32.mrf.mxu1 }
 0x2ce   : > { %v540_v57 = vadd.f32 %v538_v56, %v533_v53 }
 0x2cf   : > { %v754_v58 = vpop.f32.mrf.mxu1 }
 0x2d0   : > { %542 = vst.msk [vmem:[#allocation4 + $0x8] sm:$0xff] %vm489_vm6, %v540_v57 }
 0x2d1   : > { %v579_v59 = vpop.f32.mrf.mxu1 }
 0x2d2   : > { %v588_v60 = vadd.f32 %v586_v51, %v579_v59 }
 0x2d3   : > { %v759_v61 = vpop.f32.mrf.mxu1 }
 0x2d4   : > { %590 = vst.msk [vmem:[#allocation4 + $0x10] sm:$0xff] %vm489_vm6, %v588_v60  ;;  %595 = sbr.rel (%p726_p8) target bundleno = 876 (0x36c), region = 40 }
 0x2d5   : > { %v582_v62 = vpop.f32.mrf.mxu1 }
 0x2d6   : > { %v589_v0 = vadd.f32 %v587_v63, %v582_v62 }
 0x2d7   : > { %v760_v1 = vpop.f32.mrf.mxu1 }
 0x2d8   : > { %591 = vst.msk [vmem:[#allocation4 + $0x18] sm:$0xff] %vm489_vm6, %v589_v0 }
 0x2d9   : > { %v598_v2 = vld [vmem:[#allocation3 + $0x10] sm:$0xff]  ;;  %v596_v3 = vld [vmem:[#allocation3] sm:$0xff]  ;;  %v599_v4 = vld [vmem:[#allocation3 + $0x18] sm:$0xff]  ;;  %v885_v5 = vmov 0  }
 0x2da   : > { %831 = vset.pattern.permute.xlu1 %v885_v5  ;;  %830 = vset.pattern.permute.xlu0 %v885_v5  ;;  %832 = vrcp.f32 %v598_v2  ;;  %v597_v6 = vld [vmem:[#allocation3 + $0x8] sm:$0xff]  ;;  %v604_v12 = vld [vmem:[#allocation4] sm:$0xff] }
 0x2db   : > { %834 = vrcp.f32 %v596_v3  ;;  %v606_v11 = vld [vmem:[#allocation4 + $0x10] sm:$0xff]  ;;  %v605_v18 = vld [vmem:[#allocation4 + $0x8] sm:$0xff] }
 0x2dc   : > { %836 = vrcp.f32 %v599_v4 }
 0x2dd   : > { %838 = vrcp.f32 %v597_v6 }
 0x2df   : > { %v607_v17 = vld [vmem:[#allocation4 + $0x18] sm:$0xff] }
 0x2e7   : > { %v833_v7 = vpop.eup %832 }
 0x2e8   : > { %v835_v8 = vpop.eup %834  ;;  %620 = vperm.xlu1 %831, %v833_v7  }
 0x2e9   : > { %v837_v9 = vpop.eup %836  ;;  %610 = vperm.xlu0 %830, %v835_v8  }
 0x2ea   : > { %v839_v10 = vpop.eup %838 }
 0x2ec   : > { %625 = vperm.xlu1 %831, %v837_v9  }
 0x2ed   : > { %615 = vperm.xlu0 %830, %v839_v10  }
 0x363   : > { %v621_v13 = vpop.permute.xlu1 %620 }
 0x364   : > { %v630_v14 = vmul.f32 %v621_v13, %v606_v11  ;;  %v611_v15 = vpop.permute.xlu0 %610 }
 0x365   : > { %v628_v16 = vmul.f32 %v611_v15, %v604_v12 }
 0x366   : > { %634 = vst.msk [vmem:[%s943_s25 + $0x10] sm:$0xff] %vm489_vm6, %v630_v14 }
 0x367   : > { %632 = vst.msk [vmem:[%s943_s25] sm:$0xff] %vm489_vm6, %v628_v16  ;;  %v626_v19 = vpop.permute.xlu1 %625 }
 0x368   : > { %v631_v20 = vmul.f32 %v626_v19, %v607_v17  ;;  %v616_v21 = vpop.permute.xlu0 %615 }
 0x369   : > { %v629_v22 = vmul.f32 %v616_v21, %v605_v18 }
 0x36a   : > { %635 = vst.msk [vmem:[%s943_s25 + $0x18] sm:$0xff] %vm489_vm6, %v631_v20 }
 0x36b   : > { %633 = vst.msk [vmem:[%s943_s25 + $0x8] sm:$0xff] %vm489_vm6, %v629_v22 }
 0x36c PF: > { %s13_s16 = sadd.s32 1, %s878_s16   ;;  %s1071_s12 = smov %s870_s14 }
 0x36d   : > { %p10_p9 = scmp.ge.s32.totalorder %s13_s16, 6   ;;  %s1072_s13 = smov %s874_s15 }
 0x36e   : > { %s1073_s14 = smov %s1076_s17  ;;  %s1074_s15 = smov %s1080_s18 }
 0x36f   :  { %12 = sbr.rel (!%p10_p9) target bundleno = 3 (0x3), region = 70 }

</bundles_post_ra>
